<compile_context>
chip_gen: v6e
topology: v6e:2x2x1
jax: 0.10.0
libtpu: 0.0.40
codegen_flags: <defaults>
</compile_context>

<pallas_src>
import jax
import jax.numpy as jnp
from jax.experimental import pallas as pl
from jax.experimental.pallas import tpu as pltpu

_LANE = 128
_SUBLANE = 8


# --------------------------------------------------------------------------------------
# Kernels
# --------------------------------------------------------------------------------------
def _critic_kernel_fused(x_ref, w1_ref, b1_ref, w2_ref, b2_ref, out_ref):
    """Single-K-block kernel: fc1 + ReLU + fc3 for one batch tile."""
    # fc1: (TB, D) @ (D, 64) -> (TB, 64), f32 accumulation on the MXU.
    h = jnp.dot(x_ref[...], w1_ref[...],
                preferred_element_type=jnp.float32,
                precision=jax.lax.Precision.HIGHEST)
    h = jnp.maximum(h + b1_ref[...], 0.0)
    # fc3, lane-dense: (8, 64) @ (TB, 64)^T -> (8, TB); all 8 rows of w2 are identical
    # (replicated in the wrapper) so the MXU M-dim stays sublane-aligned; keep row 0.
    v = jax.lax.dot_general(
        w2_ref[...], h,
        dimension_numbers=(((1,), (1,)), ((), ())),
        preferred_element_type=jnp.float32,
        precision=jax.lax.Precision.HIGHEST)
    out_ref[...] = (v[0:1, :] + b2_ref[0, 0]).astype(out_ref.dtype)


def _critic_kernel_ktiled(x_ref, w1_ref, b1_ref, w2_ref, b2_ref, out_ref, acc_ref):
    """K-tiled kernel for large input_size: grid = (batch tiles, K tiles)."""
    k = pl.program_id(1)

    @pl.when(k == 0)
    def _():
        acc_ref[...] = jnp.zeros_like(acc_ref)

    acc_ref[...] += jnp.dot(x_ref[...], w1_ref[...],
                            preferred_element_type=jnp.float32,
                            precision=jax.lax.Precision.HIGHEST)

    @pl.when(k == pl.num_programs(1) - 1)
    def _():
        h = jnp.maximum(acc_ref[...] + b1_ref[...], 0.0)
        v = jax.lax.dot_general(
            w2_ref[...], h,
            dimension_numbers=(((1,), (1,)), ((), ())),
            preferred_element_type=jnp.float32,
            precision=jax.lax.Precision.HIGHEST)
        out_ref[...] = (v[0:1, :] + b2_ref[0, 0]).astype(out_ref.dtype)


# --------------------------------------------------------------------------------------
# Tiling / VMEM planning
# --------------------------------------------------------------------------------------
def _round_up(x, m):
    return ((x + m - 1) // m) * m


def _buf_bytes(rows, cols, itemsize):
    # VMEM buffers are padded to the (8, 128) sublane/lane quanta.
    return _round_up(max(rows, 1), _SUBLANE) * _round_up(max(cols, 1), _LANE) * itemsize


def _vmem_bytes(tb, tk, hidden, x_isz, w_isz):
    n = 0
    n += 2 * _buf_bytes(tb, tk, x_isz)       # state tile, double-buffered
    n += 2 * _buf_bytes(tk, hidden, w_isz)   # W1 block (constant index map; assume 2 buffers)
    n += 2 * _buf_bytes(1, hidden, 4)        # b1
    n += 2 * _buf_bytes(8, hidden, 4)        # replicated W2 rows
    n += 2 * _buf_bytes(1, tb, 4)            # (1, TB) output row, double-buffered
    n += _buf_bytes(tb, hidden, 4)           # h / f32 accumulator intermediate
    n += _buf_bytes(8, tb, 4)                # (8, TB) second-matmul result
    return n


def _plan_tiles(B, D, hidden, x_isz, w_isz, *, tb=None, tk=None,
                target_dma_bytes=4 << 20, tb_max=16384, vmem_budget=26 << 20):
    # ---- K (input-feature) tiling: only when D is large and lane-divisible ----
    if tk is None:
        if D > 2048 and D % _LANE == 0:
            g = D // _LANE
            best = 1
            for cand in range(1, g + 1):
                if g % cand == 0 and cand * _LANE <= 1024:
                    best = cand
            tk = best * _LANE
        else:
            tk = D
    if tk != D:
        assert D % tk == 0 and tk % _LANE == 0, (
            "tk must be a lane-aligned (multiple of 128) divisor of input_size")
    nk = D // tk if tk != 0 else 1

    # ---- batch tiling: target a fixed DMA size per step, not a small fixed cap ----
    if tb is None:
        tb = _round_up(max(target_dma_bytes // max(tk * x_isz, 1), 1), _LANE)
        tb = min(tb, tb_max)
        tb = min(tb, _round_up(B, _LANE))              # no bigger than the batch needs
        if B >= 4 * _LANE:                             # keep >= 4 steps (2 per v7x core)
            tb = min(tb, _round_up(pl.cdiv(B, 4), _LANE))
        tb = max(tb, _LANE)
    assert tb % _LANE == 0, "tb must be a multiple of 128 (lane-dense output rows)"

    # ---- shrink the batch tile until the (honest) VMEM footprint fits the budget ----
    while tb > _LANE and _vmem_bytes(tb, tk, hidden, x_isz, w_isz) > vmem_budget:
        tb = max(_LANE, (tb // 2 // _LANE) * _LANE)

    vmem_need = _vmem_bytes(tb, tk, hidden, x_isz, w_isz)
    vmem_limit = max(32 << 20, vmem_need + (4 << 20))
    assert vmem_limit <= 56 << 20, (
        f"Estimated VMEM footprint {vmem_need >> 20} MiB exceeds safe limits even at tb=128; "
        "input_size is too large for a single K block -- pass a lane-aligned divisor as tk.")
    return tb, tk, nk, int(vmem_limit)


# --------------------------------------------------------------------------------------
# Forward
# --------------------------------------------------------------------------------------
def critic_forward(state, w1, b1, w2, b2, *, tb=None, tk=None):
    """state: (B, D) float32 or bfloat16 -> (B, 1) float32 state values."""
    B, D = state.shape
    H = w1.shape[1]
    assert w1.shape == (D, H)
    assert w2.shape == (H, 1)

    x_isz = jnp.dtype(state.dtype).itemsize
    w_isz = jnp.dtype(w1.dtype).itemsize
    tb, tk, nk, vmem_limit = _plan_tiles(B, D, H, x_isz, w_isz, tb=tb, tk=tk)
    nb = pl.cdiv(B, tb)

    b1_row = b1.reshape(1, H).astype(jnp.float32)
    w2_rows = jnp.tile(w2.reshape(1, H), (8, 1)).astype(jnp.float32)   # (8, H), rows identical
    b2_s = b2.reshape(1, 1).astype(jnp.float32)                        # SMEM scalar

    # Advisory cost estimate: this kernel is HBM-bound on streaming the state.
    cost = pl.CostEstimate(
        flops=int(2 * B * D * H + 2 * B * H * 8),
        transcendentals=0,
        bytes_accessed=int(B * D * x_isz + D * H * w_isz + H * 4 + 8 * H * 4 + 4 + B * 4),
    )

    if nk == 1:
        kernel = _critic_kernel_fused
        grid = (nb,)
        in_specs = [
            pl.BlockSpec((tb, D), lambda i: (i, 0)),              # state tile (streamed)
            pl.BlockSpec((D, H), lambda i: (0, 0)),               # W1 (resident)
            pl.BlockSpec((1, H), lambda i: (0, 0)),               # b1 (resident)
            pl.BlockSpec((8, H), lambda i: (0, 0)),               # W2 rows (resident)
            pl.BlockSpec(memory_space=pltpu.MemorySpace.SMEM),    # b2 scalar
        ]
        out_specs = pl.BlockSpec((1, tb), lambda i: (0, i))       # lane-dense output slab
        scratch_shapes = []
        dims = ("parallel",)
    else:
        kernel = _critic_kernel_ktiled
        grid = (nb, nk)                                           # reduction axis last
        in_specs = [
            pl.BlockSpec((tb, tk), lambda i, k: (i, k)),          # state tile (streamed)
            pl.BlockSpec((tk, H), lambda i, k: (k, 0)),           # W1 K-block (streamed)
            pl.BlockSpec((1, H), lambda i, k: (0, 0)),            # b1 (resident)
            pl.BlockSpec((8, H), lambda i, k: (0, 0)),            # W2 rows (resident)
            pl.BlockSpec(memory_space=pltpu.MemorySpace.SMEM),    # b2 scalar
        ]
        out_specs = pl.BlockSpec((1, tb), lambda i, k: (0, i))
        scratch_shapes = [pltpu.VMEM((tb, H), jnp.float32)]       # f32 accumulator
        dims = ("parallel", "arbitrary")

    out_row = pl.pallas_call(
        kernel,
        out_shape=jax.ShapeDtypeStruct((1, B), jnp.float32),      # exact B: no wrapper pad
        grid_spec=pltpu.PrefetchScalarGridSpec(
            num_scalar_prefetch=0,
            grid=grid,
            in_specs=in_specs,
            out_specs=out_specs,
            scratch_shapes=scratch_shapes,
        ),
        compiler_params=pltpu.CompilerParams(
            dimension_semantics=dims,
            vmem_limit_bytes=vmem_limit),
        cost_estimate=cost,
    )(state, w1, b1_row, w2_rows, b2_s)

    return out_row[0, :].reshape(B, 1)


# --------------------------------------------------------------------------------------
# Params / reference / demo
# --------------------------------------------------------------------------------------
def init_critic_params(key, input_size, hidden=64):
    """Deterministic init mimicking PyTorch nn.Linear default (uniform +/- 1/sqrt(fan_in))."""
    k1, k2, k3, k4 = jax.random.split(key, 4)
    lim1 = 1.0 / jnp.sqrt(jnp.float32(input_size))
    lim2 = 1.0 / jnp.sqrt(jnp.float32(hidden))
    w1 = jax.random.uniform(k1, (input_size, hidden), jnp.float32, -lim1, lim1)
    b1 = jax.random.uniform(k2, (hidden,), jnp.float32, -lim1, lim1)
    w2 = jax.random.uniform(k3, (hidden, 1), jnp.float32, -lim2, lim2)
    b2 = jax.random.uniform(k4, (1,), jnp.float32, -lim2, lim2)
    return w1, b1, w2, b2


def _reference(state, w1, b1, w2, b2):
    hp = jax.lax.Precision.HIGHEST
    s32 = state.astype(jnp.float32)
    w132 = w1.astype(jnp.float32)
    h = jnp.maximum(jnp.dot(s32, w132, precision=hp) + b1, 0.0)
    return jnp.dot(h, w2, precision=hp) + b2


if __name__ == "__main__":
    key = jax.random.PRNGKey(0)
    k_params, k_state = jax.random.split(key)

    # 1) Small demo consistent with the module: batch of 8 states, input_size = 32.
    B, input_size = 8, 32
    w1, b1, w2, b2 = init_critic_params(k_params, input_size)
    state = jax.random.normal(k_state, (B, input_size), jnp.float32)

    out = jax.block_until_ready(critic_forward(state, w1, b1, w2, b2))
    ref = _reference(state, w1, b1, w2, b2)
    assert out.shape == (B, 1)
    assert jnp.allclose(out, ref, atol=1e-5, rtol=1e-5)

    # 2) Partial last batch block (B not a multiple of the tile), no wrapper pad.
    B2 = 300
    state2 = jax.random.normal(jax.random.PRNGKey(1), (B2, input_size), jnp.float32)
    out2 = jax.block_until_ready(critic_forward(state2, w1, b1, w2, b2, tb=128))
    assert jnp.allclose(out2, _reference(state2, w1, b1, w2, b2), atol=1e-5, rtol=1e-5)

    # 3) K-tiled (large input_size) reduction path, exercised at small shapes.
    B3, D3 = 16, 256
    w1c, b1c, w2c, b2c = init_critic_params(jax.random.PRNGKey(2), D3)
    state3 = jax.random.normal(jax.random.PRNGKey(3), (B3, D3), jnp.float32)
    out3 = jax.block_until_ready(critic_forward(state3, w1c, b1c, w2c, b2c, tk=128))
    assert jnp.allclose(out3, _reference(state3, w1c, b1c, w2c, b2c), atol=1e-4, rtol=1e-4)

    # 4) bf16 streaming path (caller hands over bf16; accumulation stays f32 in-kernel).
    state4 = state.astype(jnp.bfloat16)
    w1b = w1.astype(jnp.bfloat16)
    out4 = jax.block_until_ready(critic_forward(state4, w1b, b1, w2, b2))
    assert jnp.allclose(out4, _reference(state4, w1b, b1, w2, b2), atol=2e-3, rtol=2e-3)

    print("KERNEL_OK")
</pallas_src>

<mosaic_0001>
module attributes {stable_mosaic.version = 11 : i64} {
  func.func @_critic_kernel_fused(%arg0: i32, %arg1: memref<128x32xf32, #tpu.memory_space<vmem>>, %arg2: memref<32x64xf32, #tpu.memory_space<vmem>>, %arg3: memref<1x64xf32, #tpu.memory_space<vmem>>, %arg4: memref<8x64xf32, #tpu.memory_space<vmem>>, %arg5: memref<1x1xf32, #tpu.memory_space<smem>>, %arg6: memref<1x128xf32, #tpu.memory_space<vmem>>) attributes {dimension_semantics = [#tpu.dimension_semantics<parallel>], iteration_bounds = array<i64: 1>, scalar_prefetch = 0 : i64, scratch_operands = 0 : i64, tpu.core_type = #tpu.core_type<tc>, window_params = [{transform_indices = @transform_0, window_bounds = array<i64: 128, 32>}, {pipeline_mode = #tpu.pipeline_mode<synchronous>, transform_indices = @transform_1, window_bounds = array<i64: 32, 64>}, {pipeline_mode = #tpu.pipeline_mode<synchronous>, transform_indices = @transform_2, window_bounds = array<i64: 1, 64>}, {pipeline_mode = #tpu.pipeline_mode<synchronous>, transform_indices = @transform_3, window_bounds = array<i64: 8, 64>}, {transform_indices = @transform_4, window_bounds = array<i64: 1, 1>}, {transform_indices = @transform_5, window_bounds = array<i64: 1, 128>}]} {
    %c0 = arith.constant 0 : index
    %c0_0 = arith.constant 0 : index
    %0 = vector.load %arg1[%c0, %c0_0] : memref<128x32xf32, #tpu.memory_space<vmem>>, vector<128x32xf32>
    %c0_1 = arith.constant 0 : index
    %c0_2 = arith.constant 0 : index
    %1 = vector.load %arg2[%c0_1, %c0_2] : memref<32x64xf32, #tpu.memory_space<vmem>>, vector<32x64xf32>
    %cst = arith.constant dense<0.000000e+00> : vector<128x64xf32>
    %2 = tpu.matmul %0, %1, %cst {dimension_numbers = #tpu.dot_dimension_numbers<[1], [0], [0], [1], [0, 0, 1, 1], [], []>, precision = #tpu.contract_precision<fp32>} : vector<128x32xf32>, vector<32x64xf32>, vector<128x64xf32> -> vector<128x64xf32>
    %c0_3 = arith.constant 0 : index
    %c0_4 = arith.constant 0 : index
    %3 = vector.load %arg3[%c0_3, %c0_4] : memref<1x64xf32, #tpu.memory_space<vmem>>, vector<1x64xf32>
    %4 = vector.broadcast %3 : vector<1x64xf32> to vector<128x64xf32>
    %5 = arith.addf %2, %4 : vector<128x64xf32>
    %cst_5 = arith.constant 0.000000e+00 : f32
    %6 = vector.broadcast %cst_5 : f32 to vector<128x64xf32>
    %7 = arith.maximumf %5, %6 : vector<128x64xf32>
    %c0_6 = arith.constant 0 : index
    %c0_7 = arith.constant 0 : index
    %8 = vector.load %arg4[%c0_6, %c0_7] : memref<8x64xf32, #tpu.memory_space<vmem>>, vector<8x64xf32>
    %cst_8 = arith.constant dense<0.000000e+00> : vector<8x128xf32>
    %9 = tpu.matmul %8, %7, %cst_8 {dimension_numbers = #tpu.dot_dimension_numbers<[1], [1], [0], [0], [0, 0, 1, 0], [], []>, precision = #tpu.contract_precision<fp32>} : vector<8x64xf32>, vector<128x64xf32>, vector<8x128xf32> -> vector<8x128xf32>
    %10 = vector.extract_strided_slice %9 {offsets = [0, 0], sizes = [1, 128], strides = [1, 1]} : vector<8x128xf32> to vector<1x128xf32>
    %c0_9 = arith.constant 0 : index
    %c0_10 = arith.constant 0 : index
    %11 = memref.load %arg5[%c0_9, %c0_10] : memref<1x1xf32, #tpu.memory_space<smem>>
    %12 = vector.broadcast %11 : f32 to vector<1x128xf32>
    %13 = arith.addf %10, %12 : vector<1x128xf32>
    %c0_11 = arith.constant 0 : index
    %c0_12 = arith.constant 0 : index
    %14 = vector.load %arg6[%c0_11, %c0_12] : memref<1x128xf32, #tpu.memory_space<vmem>>, vector<1x128xf32>
    tpu.vector_store %arg6[%c0_11, %c0_12], %13 {strides = array<i32>} : memref<1x128xf32, #tpu.memory_space<vmem>>, vector<1x128xf32>,
    return
  }
  func.func @transform_0(%arg0: i32) -> (i32, i32) {
    %c0_i32 = arith.constant 0 : i32
    %c0_i32_0 = arith.constant 0 : i32
    return %arg0, %c0_i32 : i32, i32
  }
  func.func @transform_1(%arg0: i32) -> (i32, i32) {
    %c0_i32 = arith.constant 0 : i32
    %c0_i32_0 = arith.constant 0 : i32
    %c0_i32_1 = arith.constant 0 : i32
    return %c0_i32, %c0_i32_0 : i32, i32
  }
  func.func @transform_2(%arg0: i32) -> (i32, i32) {
    %c0_i32 = arith.constant 0 : i32
    %c0_i32_0 = arith.constant 0 : i32
    %c0_i32_1 = arith.constant 0 : i32
    return %c0_i32, %c0_i32_0 : i32, i32
  }
  func.func @transform_3(%arg0: i32) -> (i32, i32) {
    %c0_i32 = arith.constant 0 : i32
    %c0_i32_0 = arith.constant 0 : i32
    %c0_i32_1 = arith.constant 0 : i32
    return %c0_i32, %c0_i32_0 : i32, i32
  }
  func.func @transform_4(%arg0: i32) -> (i32, i32) {
    %c0_i32 = arith.constant 0 : i32
    %c0_i32_0 = arith.constant 0 : i32
    %c0_i32_1 = arith.constant 0 : i32
    return %c0_i32, %c0_i32_0 : i32, i32
  }
  func.func @transform_5(%arg0: i32) -> (i32, i32) {
    %c0_i32 = arith.constant 0 : i32
    %c0_i32_0 = arith.constant 0 : i32
    return %c0_i32, %arg0 : i32, i32
  }
}

</mosaic_0001>

<bundles_post_ra>
// kernel: tpu_custom_call.1
= control target key start
LH: loop header
LB: loop body
LE: loop exit
PB: predicated region body
PF: predicated region fallthrough
CT: control target
= control target key end

     0   :  { %11 = vsyncpa [#allocation4], 0  ;;  %s3596_s0 = inlined_call_operand.hbm [shape: f32[8,32], index: 0, kind: input, shape index: {}]   ;;  %s3597_s1 = inlined_call_operand.hbm [shape: f32[32,64], index: 1, kind: input, shape index: {}]   ;;  %s3598_s2 = inlined_call_operand.vmem [shape: f32[1,64], index: 2, kind: input, shape index: {}]   ;;  %s3599_s3 = inlined_call_operand.hbm [shape: f32[8,64], index: 3, kind: input, shape index: {}]   ;;  %s3600_s4 = inlined_call_operand.<no memory space> [shape: f32[1,1], index: 4, kind: input, shape index: {}]   ;;  %s3601_s5 = inlined_call_operand.hbm [shape: f32[1,8], index: 5, kind: output, shape index: {}]  }
   0x1   :  { %12 = vsyncpa [#allocation7], 0 }
   0x2   :  { %13 = vsyncpa [#allocation5], 0 }
   0x3   :  { %18 = vsyncadd [#allocation4], 1920  ;;  %s2716_s18 = smov [#allocation6]   ;;  %s2717_s20 = smov [#allocation3]  }
   0x4   :  { %s31_s19 = sshll.u32 %s2716_s18, 4  ;;  %s19_s21 = sshll.u32 %s2717_s20, 4  ;;  %s32_s19 = int_to_ptr.vmem [resolvable:$true] %s31_s19  ;;  %s20_s21 = int_to_ptr.vmem [resolvable:$true] %s19_s21 }
   0x5   :  { %s2638_s22 = scalar_lea.vmem %s32_s19, 512  ;;  %p2643_p1 = scmp.lt.s32.totalorder %s32_s19, %s32_s19 }
   0x6   :  { %p2639_p0 = scmp.ne.s32.totalorder %s32_s19, %s2638_s22  ;;  %p2644_p2 = scmp.lt.s32.totalorder %s2638_s22, %s2638_s22 }
   0x8   :  { %p2645_p3 = por %p2644_p2, %p2643_p1 }
   0xa   :  { %p2646_p4 = pnand %p2645_p3, %p2639_p0 }
   0xc   :  { %2649 = shalt.err (!%p2646_p4)
}
   0xd   :  { %s2718_s23 = smov 128   ;;  %s2719_s24 = smov 8  }
   0xe   :  { %37 = dma.hbm_to_vmem [thread:$0]  %s3597_s1, 512, %s32_s19, [#allocation7], %s2718_s23, %s2718_s23, %s2719_s24  }
   0xf   :  { %s2658_s27 = scalar_lea.vmem %s20_s21, 128  ;;  %s2662_s28 = scalar_lea.vmem %s20_s21, 2048 }
  0x10   :  { %p2659_p5 = scmp.ne.s32.totalorder %s20_s21, %s2658_s27  ;;  %p2663_p6 = scmp.lt.s32.totalorder %s20_s21, %s20_s21 }
  0x11   :  { %p2664_p7 = scmp.lt.s32.totalorder %s2662_s28, %s2658_s27 }
  0x13   :  { %p2665_p8 = por %p2664_p7, %p2663_p6 }
  0x15   :  { %p2666_p9 = pnand %p2665_p8, %p2659_p5 }
  0x17   :  { %2669 = shalt.err (!%p2666_p9)
}
  0x18   :  { %25 = dma.hbm_to_vmem [thread:$0]  %s3596_s0, 128, %s20_s21, [#allocation4], %s2718_s23, %s2718_s23, %s2719_s24  }
  0x19   :  { %s2720_s6 = smov [#allocation8]  }
  0x1a   :  { %s46_s7 = sshll.u32 %s2720_s6, 4  ;;  %s47_s7 = int_to_ptr.vmem [resolvable:$true] %s46_s7 }
  0x1b   :  { %s2678_s8 = scalar_lea.vmem %s47_s7, 128  ;;  %p2683_p11 = scmp.lt.s32.totalorder %s47_s7, %s47_s7 }
  0x1c   :  { %p2679_p10 = scmp.ne.s32.totalorder %s47_s7, %s2678_s8  ;;  %p2684_p12 = scmp.lt.s32.totalorder %s2678_s8, %s2678_s8 }
  0x1e   :  { %p2685_p13 = por %p2684_p12, %p2683_p11 }
  0x20   :  { %p2686_p0 = pnand %p2685_p13, %p2679_p10 }
  0x22   :  { %2689 = shalt.err (!%p2686_p0)
}
  0x23   :  { %49 = dma.hbm_to_vmem [thread:$0]  %s3599_s3, 128, %s47_s7, [#allocation7]  }
  0x24   :  { %2710 = dma.done.wait [#allocation4], 2048  }
  0x25   :  { %2711 = vsyncadd [#allocation4], 4294965248 }
  0x26   :  { %2712 = dma.done.wait [#allocation7], 640  }
  0x27   :  { %2713 = vsyncadd [#allocation7], 4294966656  ;;  %vm88_vm0 = vcmask 261120   ;;  %v80_v0 = vld [vmem:[#allocation6 + $0x18] sm:$0xff]  ;;  %v79_v1 = vld [vmem:[#allocation6 + $0x10] sm:$0xff]  ;;  %vm2722_vm1 = vmmov 0  }
  0x28   :  { %v78_v2 = vld [vmem:[#allocation6 + $0x8] sm:$0xff]  ;;  %v2763_v3 = vand.u32 4294901760, %v80_v0  ;;  %v2765_v4 = vand.u32 4294901760, %v79_v1  ;;  %v77_v6 = vld [vmem:[#allocation6] sm:$0xff]  ;;  %v63_v12 = vld [vmem:[#allocation3 + $0x10] sm:$0xff]  ;;  %vm1284_vm2 = vcmask 523264  }
  0x29   :  { %v2767_v5 = vand.u32 4294901760, %v78_v2  ;;  %v61_v7 = vld [vmem:[#allocation3] sm:$0xff]  ;;  %v62_v8 = vld [vmem:[#allocation3 + $0x8] sm:$0xff]  ;;  %v2769_v9 = vand.u32 4294901760, %v77_v6  ;;  %v64_v13 = vld [vmem:[#allocation3 + $0x18] sm:$0xff]  ;;  %v96_v19 = vsel %vm88_vm0, %v63_v12, 0 }
  0x2a   :  { %v90_v10 = vsel %vm88_vm0, %v61_v7, 0  ;;  %v93_v11 = vsel %vm88_vm0, %v62_v8, 0  ;;  %2220 = vmatprep.subr.mxu0 %v2763_v3  ;;  %v2775_v14 = vsub.f32 %v80_v0, %v2763_v3  ;;  %v2782_v17 = vsub.f32 %v79_v1, %v2765_v4  ;;  %v65_v38 = vld [vmem:[#allocation3 + $0x20] sm:$0xff]  ;;  %v66_v39 = vld [vmem:[#allocation3 + $0x28] sm:$0xff]  ;;  %v67_v44 = vld [vmem:[#allocation3 + $0x30] sm:$0xff]  ;;  %s2723_s11 = smov [#allocation9]  }
  0x2b   :  { %v2777_v15 = vand.u32 4294901760, %v90_v10  ;;  %v2779_v16 = vand.u32 4294901760, %v93_v11  ;;  %2221 = vmatpush3.msra.mxu0 %v2763_v3  ;;  %v2786_v18 = vsub.f32 %v78_v2, %v2767_v5  ;;  %v99_v20 = vsel %vm88_vm0, %v64_v13, 0  ;;  %v68_v45 = vld [vmem:[#allocation3 + $0x38] sm:$0xff]  ;;  %v69_v50 = vld [vmem:[#allocation3 + $0x40] sm:$0xff]  ;;  %v70_v51 = vld [vmem:[#allocation3 + $0x48] sm:$0xff] }
  0x2c   :  { %v2791_v21 = vsub.f32 %v77_v6, %v2769_v9  ;;  %2222 = vmatprep.subr.mxu0 %v2765_v4  ;;  %v2795_v22 = vand.u32 4294901760, %v2775_v14  ;;  %v2804_v25 = vand.u32 4294901760, %v2782_v17  ;;  %v2811_v27 = vand.u32 4294901760, %v96_v19  ;;  %v71_v0 = vld [vmem:[#allocation3 + $0x50] sm:$0xff]  ;;  %v72_v1 = vld [vmem:[#allocation3 + $0x58] sm:$0xff]  ;;  %s1987_s12 = sshll.u32 %s2723_s11, 4  ;;  %s1988_s12 = int_to_ptr.vmem [resolvable:$true] %s1987_s12 }
  0x2d   :  { %v2798_v23 = vsub.f32 %v90_v10, %v2777_v15  ;;  %v2801_v24 = vsub.f32 %v93_v11, %v2779_v16  ;;  %2260 = vmatprep.mubr.f32.mxu1 %v2777_v15  ;;  %2223 = vmatpush3.msra.mxu0 %v2765_v4  ;;  %v2809_v26 = vand.u32 4294901760, %v2786_v18  ;;  %v2813_v28 = vand.u32 4294901760, %v99_v20  ;;  %s2690_s13 = scalar_lea.vmem %s1988_s12, 16  ;;  %s2694_s14 = scalar_lea.vmem %s1988_s12, 32 }
  0x2e   :  { %v2816_v29 = vand.u32 4294901760, %v2791_v21  ;;  %2224 = vmatprep.subr.mxu0 %v2767_v5  ;;  %v394_v30 = vsub.f32 %v2775_v14, %v2795_v22  ;;  %v401_v33 = vsub.f32 %v2782_v17, %v2804_v25  ;;  %v2829_v35 = vsub.f32 %v96_v19, %v2811_v27  ;;  %p2691_p1 = scmp.ne.s32.totalorder %s1988_s12, %s2690_s13  ;;  %p2695_p2 = scmp.lt.s32.totalorder %s1988_s12, %s1988_s12 }
  0x2f   :  { %v208_v31 = vand.u32 4294901760, %v2798_v23  ;;  %v218_v32 = vand.u32 4294901760, %v2801_v24  ;;  %2225 = vmatpush3.msra.mxu0 %v2767_v5  ;;  %v408_v34 = vsub.f32 %v2786_v18, %v2809_v26  ;;  %v2832_v36 = vsub.f32 %v99_v20, %v2813_v28  ;;  %p2696_p3 = scmp.lt.s32.totalorder %s2694_s14, %s2690_s13 }
  0x30   :  { %v415_v37 = vsub.f32 %v2791_v21, %v2816_v29  ;;  %2226 = vmatprep.subr.mxu0 %v2769_v9  ;;  %v395_v40 = vand.u32 4294901760, %v394_v30  ;;  %v402_v43 = vand.u32 4294901760, %v401_v33  ;;  %v228_v47 = vand.u32 4294901760, %v2829_v35 }
  0x31   :  { %v209_v41 = vsub.f32 %v2798_v23, %v208_v31  ;;  %v219_v42 = vsub.f32 %v2801_v24, %v218_v32  ;;  %2227 = vmatpush3.msra.mxu0 %v2769_v9  ;;  %v409_v46 = vand.u32 4294901760, %v408_v34  ;;  %v238_v48 = vand.u32 4294901760, %v2832_v36  ;;  %p2697_p4 = por %p2696_p3, %p2695_p2 }
  0x32   :  { %v416_v49 = vand.u32 4294901760, %v415_v37  ;;  %2252 = vmatprep.subr.mxu1 %v395_v40  ;;  %2284 = vmatprep.subr.mxu0 %v2775_v14  ;;  %v102_v54 = vsel %vm88_vm0, %v65_v38, 0  ;;  %v105_v55 = vsel %vm88_vm0, %v66_v39, 0  ;;  %v229_v56 = vsub.f32 %v2829_v35, %v228_v47 }
  0x33   :  { %v210_v52 = vand.u32 4294901760, %v209_v41  ;;  %v220_v53 = vand.u32 4294901760, %v219_v42  ;;  %2253 = vmatpush3.msra.mxu1 %v395_v40  ;;  %v239_v57 = vsub.f32 %v2832_v36, %v238_v48  ;;  %v2855_v58 = vand.u32 4294901760, %v102_v54  ;;  %p2698_p5 = pnand %p2697_p4, %p2691_p1 }
  0x34   :  { %v2857_v59 = vand.u32 4294901760, %v105_v55  ;;  %2254 = vmatprep.subr.mxu1 %v402_v43  ;;  %v108_v60 = vsel %vm88_vm0, %v67_v44, 0  ;;  %v111_v61 = vsel %vm88_vm0, %v68_v45, 0  ;;  %v114_v62 = vsel %vm88_vm0, %v69_v50, 0  ;;  %v74_v50 = vld [vmem:[#allocation3 + $0x68] sm:$0xff] }
  0x35   :  { %2228 = vmatprep.mubr.f32.mxu0 %v210_v52  ;;  %v117_v63 = vsel %vm88_vm0, %v70_v51, 0  ;;  %2255 = vmatpush3.msra.mxu1 %v402_v43  ;;  %v230_v2 = vand.u32 4294901760, %v229_v56  ;;  %v240_v6 = vand.u32 4294901760, %v239_v57  ;;  %v2864_v7 = vsub.f32 %v102_v54, %v2855_v58 }
  0x36   :  { %2229 = vmatmul.mubr.f32.vlgmr.msra.gmra.mxu0 %v220_v53  ;;  %v2867_v8 = vsub.f32 %v105_v55, %v2857_v59  ;;  %2256 = vmatprep.subr.mxu1 %v409_v46  ;;  %v2870_v10 = vand.u32 4294901760, %v108_v60  ;;  %v2872_v11 = vand.u32 4294901760, %v111_v61  ;;  %v2874_v12 = vand.u32 4294901760, %v114_v62 }
  0x37   :  { %2285 = vmatpush3.msra.mxu0 %v2775_v14  ;;  %v2876_v13 = vand.u32 4294901760, %v117_v63  ;;  %2231 = vmatprep.mubr.f32.mxu0 %v230_v2  ;;  %v248_v19 = vand.u32 4294901760, %v2864_v7  ;;  %v120_v30 = vsel %vm88_vm0, %v71_v0, 0  ;;  %v123_v33 = vsel %vm88_vm0, %v72_v1, 0  ;;  %v76_v0 = vld [vmem:[#allocation3 + $0x78] sm:$0xff] }
  0x38   :  { %2257 = vmatpush3.msra.mxu1 %v409_v46  ;;  %v258_v20 = vand.u32 4294901760, %v2867_v8  ;;  %v2883_v14 = vsub.f32 %v108_v60, %v2870_v10  ;;  %v2886_v34 = vsub.f32 %v111_v61, %v2872_v11  ;;  %2286 = vmatprep.subr.mxu0 %v2782_v17  ;;  %v2890_v37 = vsub.f32 %v114_v62, %v2874_v12 }
  0x39   :  { %2258 = vmatprep.subr.mxu1 %v416_v49  ;;  %v2892_v38 = vand.u32 4294901760, %v120_v30  ;;  %v249_v39 = vsub.f32 %v2864_v7, %v248_v19  ;;  %v2901_v41 = vsub.f32 %v117_v63, %v2876_v13  ;;  %v2903_v42 = vand.u32 4294901760, %v123_v33  ;;  %2287 = vmatpush3.msra.mxu0 %v2782_v17  ;;  %v75_v63 = vld [vmem:[#allocation3 + $0x70] sm:$0xff] }
  0x3a   :  { %2232 = vmatmul.mubr.f32.gmra.mxu0 %v240_v6  ;;  %2259 = vmatpush3.msra.mxu1 %v416_v49  ;;  %v259_v40 = vsub.f32 %v2867_v8, %v258_v20  ;;  %v268_v43 = vand.u32 4294901760, %v2883_v14  ;;  %v278_v44 = vand.u32 4294901760, %v2886_v34  ;;  %v288_v45 = vand.u32 4294901760, %v2890_v37  ;;  %v73_v49 = vld [vmem:[#allocation3 + $0x60] sm:$0xff] }
  0x3b   :  { %2261 = vmatmul.mubr.f32.vlgmr.msra.gmra.mxu1 %v2779_v16  ;;  %2316 = vmatprep.subr.mxu1 %v2763_v3  ;;  %v2911_v46 = vsub.f32 %v120_v30, %v2892_v38  ;;  %v250_v51 = vand.u32 4294901760, %v249_v39  ;;  %v298_v53 = vand.u32 4294901760, %v2901_v41  ;;  %v2917_v54 = vsub.f32 %v123_v33, %v2903_v42 }
  0x3c   :  { %2317 = vmatpush3.msra.mxu1 %v2763_v3  ;;  %v260_v52 = vand.u32 4294901760, %v259_v40  ;;  %2263 = vmatprep.mubr.f32.mxu1 %v2811_v27  ;;  %v269_v55 = vsub.f32 %v2883_v14, %v268_v43  ;;  %v279_v56 = vsub.f32 %v2886_v34, %v278_v44  ;;  %v289_v57 = vsub.f32 %v2890_v37, %v288_v45 }
  0x3d   :  { %2318 = vmatprep.subr.mxu1 %v2765_v4  ;;  %v308_v60 = vand.u32 4294901760, %v2911_v46  ;;  %2234 = vmatprep.mubr.f32.mxu0 %v250_v51  ;;  %v126_v61 = vsel %vm88_vm0, %v73_v49, 0  ;;  %v129_v62 = vsel %vm88_vm0, %v74_v50, 0  ;;  %v299_v2 = vsub.f32 %v2901_v41, %v298_v53 }
  0x3e   :  { %2319 = vmatpush3.msra.mxu1 %v2765_v4  ;;  %2235 = vmatmul.mubr.f32.gmra.mxu0 %v260_v52  ;;  %v270_v17 = vand.u32 4294901760, %v269_v55  ;;  %v280_v1 = vand.u32 4294901760, %v279_v56  ;;  %v318_v6 = vand.u32 4294901760, %v2917_v54  ;;  %v290_v30 = vand.u32 4294901760, %v289_v57 }
  0x3f   :  { %2264 = vmatmul.mubr.f32.gmra.mxu1 %v2813_v28  ;;  %v309_v33 = vsub.f32 %v2911_v46, %v308_v60  ;;  %2288 = vmatprep.subr.mxu0 %v2786_v18  ;;  %v2944_v39 = vand.u32 4294901760, %v126_v61  ;;  %v2946_v40 = vand.u32 4294901760, %v129_v62  ;;  %v132_v49 = vsel %vm88_vm0, %v75_v63, 0 }
  0x40   :  { %2266 = vmatprep.mubr.f32.mxu1 %v2855_v58  ;;  %2237 = vmatprep.mubr.f32.mxu0 %v270_v17  ;;  %v135_v50 = vsel %vm88_vm0, %v76_v0, 0  ;;  %v2958_v55 = vand.u32 4294901760, %v132_v49  ;;  %v319_v56 = vsub.f32 %v2917_v54, %v318_v6 }
  0x41   :  { %2289 = vmatpush3.msra.mxu0 %v2786_v18  ;;  %2320 = vmatprep.subr.mxu1 %v2767_v5  ;;  %v2953_v51 = vsub.f32 %v126_v61, %v2944_v39  ;;  %v2956_v52 = vsub.f32 %v129_v62, %v2946_v40  ;;  %v300_v18 = vand.u32 4294901760, %v299_v2  ;;  %v2965_v57 = vand.u32 4294901760, %v135_v50 }
  0x42   :  { %2290 = vmatprep.subr.mxu0 %v2791_v21  ;;  %2238 = vmatmul.mubr.f32.gmra.mxu0 %v280_v1  ;;  %v310_v61 = vand.u32 4294901760, %v309_v33  ;;  %v2971_v0 = vsub.f32 %v132_v49, %v2958_v55 }
  0x43   :  { %2267 = vmatmul.mubr.f32.gmra.mxu1 %v2857_v59  ;;  %2240 = vmatprep.mubr.f32.mxu0 %v290_v30  ;;  %v328_v62 = vand.u32 4294901760, %v2953_v51  ;;  %v338_v63 = vand.u32 4294901760, %v2956_v52  ;;  %v2975_v17 = vsub.f32 %v135_v50, %v2965_v57  ;;  %v320_v30 = vand.u32 4294901760, %v319_v56 }
  0x44   :  { %2269 = vmatprep.mubr.f32.mxu1 %v2870_v10  ;;  %2321 = vmatpush3.msra.mxu1 %v2767_v5  ;;  %v348_v2 = vand.u32 4294901760, %v2971_v0 }
  0x45   :  { %2291 = vmatpush3.msra.mxu0 %v2791_v21  ;;  %v329_v1 = vsub.f32 %v2953_v51, %v328_v62  ;;  %2322 = vmatprep.subr.mxu1 %v2769_v9  ;;  %v339_v33 = vsub.f32 %v2956_v52, %v338_v63  ;;  %v358_v21 = vand.u32 4294901760, %v2975_v17 }
  0x46   :  { %2348 = vmatprep.subr.mxu0 %v2795_v22  ;;  %2241 = vmatmul.mubr.f32.gmra.mxu0 %v300_v18  ;;  %v349_v50 = vsub.f32 %v2971_v0, %v348_v2 }
  0x47   :  { %2270 = vmatmul.mubr.f32.gmra.mxu1 %v2872_v11  ;;  %2243 = vmatprep.mubr.f32.mxu0 %v310_v61  ;;  %v330_v49 = vand.u32 4294901760, %v329_v1  ;;  %v340_v18 = vand.u32 4294901760, %v339_v33  ;;  %v359_v56 = vsub.f32 %v2975_v17, %v358_v21 }
  0x48   :  { %2272 = vmatprep.mubr.f32.mxu1 %v2874_v12  ;;  %2323 = vmatpush3.msra.mxu1 %v2769_v9  ;;  %v350_v61 = vand.u32 4294901760, %v349_v50 }
  0x49   :  { %2380 = vmatprep.subr.mxu1 %v2763_v3  ;;  %v360_v1 = vand.u32 4294901760, %v359_v56 }
  0x4a   :  { %2244 = vmatmul.mubr.f32.gmra.mxu0 %v320_v30 }
  0x4b   :  { %2273 = vmatmul.mubr.f32.gmra.mxu1 %v2876_v13  ;;  %2246 = vmatprep.mubr.f32.mxu0 %v330_v49 }
  0x4c   :  { %2275 = vmatprep.mubr.f32.mxu1 %v2892_v38 }
  0x4e   :  { %2247 = vmatmul.mubr.f32.gmra.mxu0 %v340_v18 }
  0x4f   :  { %2276 = vmatmul.mubr.f32.gmra.mxu1 %v2903_v42  ;;  %2249 = vmatprep.mubr.f32.mxu0 %v350_v61 }
  0x50   :  { %2278 = vmatprep.mubr.f32.mxu1 %v2944_v39 }
  0x52   :  { %2250 = vmatmul.mubr.f32.gmra.mxu0 %v360_v1 }
  0x53   :  { %2279 = vmatmul.mubr.f32.gmra.mxu1 %v2946_v40  ;;  %2292 = vmatprep.mubr.f32.mxu0 %v2798_v23 }
  0x54   :  { %2281 = vmatprep.mubr.f32.mxu1 %v2958_v55 }
  0x56   :  { %2293 = vmatmul.mubr.f32.vlgmr.msra.gmra.mxu0 %v2801_v24 }
  0x57   :  { %2282 = vmatmul.mubr.f32.gmra.mxu1 %v2965_v57  ;;  %2295 = vmatprep.mubr.f32.mxu0 %v2829_v35 }
  0x58   :  { %2324 = vmatprep.mubr.f32.mxu1 %v208_v31  ;;  %2349 = vmatpush3.msra.mxu0 %v2795_v22 }
  0x59   :  { %2350 = vmatprep.subr.mxu0 %v2804_v25 }
  0x5a   :  { %2296 = vmatmul.mubr.f32.gmra.mxu0 %v2832_v36 }
  0x5b   :  { %2325 = vmatmul.mubr.f32.vlgmr.msra.gmra.mxu1 %v218_v32  ;;  %2298 = vmatprep.mubr.f32.mxu0 %v2864_v7 }
  0x5c   :  { %2381 = vmatpush3.msra.mxu1 %v2763_v3  ;;  %2327 = vmatprep.mubr.f32.mxu1 %v228_v47  ;;  %v2721_v3 = vmov 0.0  }
  0x5d   :  { %2351 = vmatpush3.msra.mxu0 %v2804_v25  ;;  %2382 = vmatprep.subr.mxu1 %v2765_v4 }
  0x5e   :  { %2352 = vmatprep.subr.mxu0 %v2809_v26  ;;  %2299 = vmatmul.mubr.f32.gmra.mxu0 %v2867_v8 }
  0x5f   :  { %2328 = vmatmul.mubr.f32.gmra.mxu1 %v238_v48  ;;  %2301 = vmatprep.mubr.f32.mxu0 %v2883_v14 }
  0x60   :  { %2330 = vmatprep.mubr.f32.mxu1 %v248_v19  ;;  %2383 = vmatpush3.msra.mxu1 %v2765_v4  ;;  %v3104_v4 = vld [vmem:[%s3598_s2] ss:$0 sm:$0xff] }
  0x61   :  { %2353 = vmatpush3.msra.mxu0 %v2809_v26  ;;  %2384 = vmatprep.subr.mxu1 %v2767_v5 }
  0x62   :  { %2354 = vmatprep.subr.mxu0 %v2816_v29  ;;  %2302 = vmatmul.mubr.f32.gmra.mxu0 %v2886_v34 }
  0x63   :  { %2331 = vmatmul.mubr.f32.gmra.mxu1 %v258_v20  ;;  %2304 = vmatprep.mubr.f32.mxu0 %v2890_v37 }
  0x64   :  { %2333 = vmatprep.mubr.f32.mxu1 %v268_v43  ;;  %2385 = vmatpush3.msra.mxu1 %v2767_v5 }
  0x65   :  { %2355 = vmatpush3.msra.mxu0 %v2816_v29  ;;  %2386 = vmatprep.subr.mxu1 %v2769_v9 }
  0x66   :  { %2305 = vmatmul.mubr.f32.gmra.mxu0 %v2901_v41  ;;  %2387 = vmatpush3.msra.mxu1 %v2769_v9 }
  0x67   :  { %2334 = vmatmul.mubr.f32.gmra.mxu1 %v278_v44  ;;  %2307 = vmatprep.mubr.f32.mxu0 %v2911_v46 }
  0x68   :  { %2336 = vmatprep.mubr.f32.mxu1 %v288_v45  ;;  %2412 = vmatprep.subr.mxu0 %v2721_v3 }
  0x69   :  { %2447 = vmatprep.subr.mxu1 %v2721_v3 }
  0x6a   :  { %2308 = vmatmul.mubr.f32.gmra.mxu0 %v2917_v54 }
  0x6b   :  { %2337 = vmatmul.mubr.f32.gmra.mxu1 %v298_v53  ;;  %2310 = vmatprep.mubr.f32.mxu0 %v2953_v51 }
  0x6c   :  { %2339 = vmatprep.mubr.f32.mxu1 %v308_v60 }
  0x6e   :  { %2311 = vmatmul.mubr.f32.gmra.mxu0 %v2956_v52 }
  0x6f   :  { %2340 = vmatmul.mubr.f32.gmra.mxu1 %v318_v6  ;;  %2313 = vmatprep.mubr.f32.mxu0 %v2971_v0 }
  0x70   :  { %2342 = vmatprep.mubr.f32.mxu1 %v328_v62 }
  0x72   :  { %2314 = vmatmul.mubr.f32.gmra.mxu0 %v2975_v17 }
  0x73   :  { %2343 = vmatmul.mubr.f32.gmra.mxu1 %v338_v63  ;;  %2356 = vmatprep.mubr.f32.mxu0 %v2777_v15 }
  0x74   :  { %2345 = vmatprep.mubr.f32.mxu1 %v348_v2 }
  0x76   :  { %2357 = vmatmul.mubr.f32.vlgmr.msra.gmra.mxu0 %v2779_v16 }
  0x77   :  { %2346 = vmatmul.mubr.f32.gmra.mxu1 %v358_v21  ;;  %2359 = vmatprep.mubr.f32.mxu0 %v2811_v27 }
  0x78   :  { %2388 = vmatprep.mubr.f32.mxu1 %v2777_v15 }
  0x7a   :  { %2360 = vmatmul.mubr.f32.gmra.mxu0 %v2813_v28 }
  0x7b   :  { %2389 = vmatmul.mubr.f32.vlgmr.msra.gmra.mxu1 %v2779_v16  ;;  %2362 = vmatprep.mubr.f32.mxu0 %v2855_v58 }
  0x7c   :  { %2391 = vmatprep.mubr.f32.mxu1 %v2811_v27 }
  0x7e   :  { %2363 = vmatmul.mubr.f32.gmra.mxu0 %v2857_v59 }
  0x7f   :  { %2392 = vmatmul.mubr.f32.gmra.mxu1 %v2813_v28  ;;  %2365 = vmatprep.mubr.f32.mxu0 %v2870_v10 }
  0x80   :  { %2394 = vmatprep.mubr.f32.mxu1 %v2855_v58 }
  0x82   :  { %2366 = vmatmul.mubr.f32.gmra.mxu0 %v2872_v11 }
  0x83   :  { %2395 = vmatmul.mubr.f32.gmra.mxu1 %v2857_v59  ;;  %2368 = vmatprep.mubr.f32.mxu0 %v2874_v12 }
  0x84   :  { %2397 = vmatprep.mubr.f32.mxu1 %v2870_v10 }
  0x86   :  { %2369 = vmatmul.mubr.f32.gmra.mxu0 %v2876_v13 }
  0x87   :  { %2398 = vmatmul.mubr.f32.gmra.mxu1 %v2872_v11  ;;  %2371 = vmatprep.mubr.f32.mxu0 %v2892_v38 }
  0x88   :  { %2400 = vmatprep.mubr.f32.mxu1 %v2874_v12 }
  0x8a   :  { %2372 = vmatmul.mubr.f32.gmra.mxu0 %v2903_v42 }
  0x8b   :  { %2401 = vmatmul.mubr.f32.gmra.mxu1 %v2876_v13  ;;  %2374 = vmatprep.mubr.f32.mxu0 %v2944_v39 }
  0x8c   :  { %2403 = vmatprep.mubr.f32.mxu1 %v2892_v38 }
  0x8e   :  { %2375 = vmatmul.mubr.f32.gmra.mxu0 %v2946_v40 }
  0x8f   :  { %2404 = vmatmul.mubr.f32.gmra.mxu1 %v2903_v42  ;;  %2377 = vmatprep.mubr.f32.mxu0 %v2958_v55 }
  0x90   :  { %2406 = vmatprep.mubr.f32.mxu1 %v2944_v39 }
  0x92   :  { %2378 = vmatmul.mubr.f32.gmra.mxu0 %v2965_v57 }
  0x93   :  { %2407 = vmatmul.mubr.f32.gmra.mxu1 %v2946_v40  ;;  %2444 = vmatprep.mubr.msk.f32.mxu0 %vm2722_vm1, %v2721_v3 }
  0x94   :  { %2409 = vmatprep.mubr.f32.mxu1 %v2958_v55 }
  0x97   :  { %2410 = vmatmul.mubr.f32.gmra.mxu1 %v2965_v57 }
  0x98   :  { %2479 = vmatprep.mubr.msk.f32.mxu1 %vm2722_vm1, %v2721_v3 }
  0xf6   :  { %v2230_v5 = vpop.f32.mrf.mxu0 }
  0xf7   :  { %v223_v9 = vadd.f32 %v2230_v5, %v3104_v4 }
  0xf8   :  { %v212_v15 = vpop.f32.mrf.mxu0 }
  0xf9   :  { %v213_v23 = vadd.f32 %v3104_v4, %v212_v15 }
  0xfa   :  { %v2233_v16 = vpop.f32.mrf.mxu0 }
  0xfb   :  { %v2262_v22 = vpop.f32.mrf.mxu1  ;;  %v243_v24 = vadd.f32 %v2233_v16, %v3104_v4 }
  0xfc   :  { %v232_v25 = vpop.f32.mrf.mxu0  ;;  %v460_v26 = vadd.f32 %v2262_v22, %v223_v9 }
  0xfd   :  { %v453_v27 = vpop.f32.mrf.mxu1  ;;  %v233_v32 = vadd.f32 %v3104_v4, %v232_v25 }
  0xfe   :  { %v454_v28 = vadd.f32 %v453_v27, %v213_v23  ;;  %v2236_v29 = vpop.f32.mrf.mxu0 }
  0xff   :  { %v2265_v31 = vpop.f32.mrf.mxu1  ;;  %v263_v35 = vadd.f32 %v2236_v29, %v3104_v4 }
 0x100   :  { %v472_v36 = vadd.f32 %v2265_v31, %v243_v24  ;;  %v252_v47 = vpop.f32.mrf.mxu0 }
 0x101   :  { %v465_v48 = vpop.f32.mrf.mxu1  ;;  %v253_v8 = vadd.f32 %v3104_v4, %v252_v47 }
 0x102   :  { %v466_v58 = vadd.f32 %v465_v48, %v233_v32  ;;  %v2239_v59 = vpop.f32.mrf.mxu0 }
 0x103   :  { %v2268_v7 = vpop.f32.mrf.mxu1  ;;  %v283_v10 = vadd.f32 %v2239_v59, %v3104_v4 }
 0x104   :  { %v484_v11 = vadd.f32 %v2268_v7, %v263_v35  ;;  %v272_v12 = vpop.f32.mrf.mxu0 }
 0x105   :  { %v477_v13 = vpop.f32.mrf.mxu1  ;;  %v273_v34 = vadd.f32 %v3104_v4, %v272_v12 }
 0x106   :  { %v478_v19 = vadd.f32 %v477_v13, %v253_v8  ;;  %v2242_v20 = vpop.f32.mrf.mxu0 }
 0x107   :  { %v2271_v14 = vpop.f32.mrf.mxu1  ;;  %v303_v37 = vadd.f32 %v2242_v20, %v3104_v4 }
 0x108   :  { %v496_v38 = vadd.f32 %v2271_v14, %v283_v10  ;;  %v292_v41 = vpop.f32.mrf.mxu0 }
 0x109   :  { %v489_v42 = vpop.f32.mrf.mxu1  ;;  %v293_v46 = vadd.f32 %v3104_v4, %v292_v41 }
 0x10a   :  { %v490_v43 = vadd.f32 %v489_v42, %v273_v34  ;;  %v2245_v44 = vpop.f32.mrf.mxu0 }
 0x10b   :  { %v2274_v45 = vpop.f32.mrf.mxu1  ;;  %v323_v53 = vadd.f32 %v2245_v44, %v3104_v4 }
 0x10c   :  { %v508_v54 = vadd.f32 %v2274_v45, %v303_v37  ;;  %v312_v60 = vpop.f32.mrf.mxu0 }
 0x10d   :  { %v501_v6 = vpop.f32.mrf.mxu1  ;;  %v313_v52 = vadd.f32 %v3104_v4, %v312_v60 }
 0x10e   :  { %v502_v39 = vadd.f32 %v501_v6, %v293_v46  ;;  %v2248_v40 = vpop.f32.mrf.mxu0 }
 0x10f   :  { %v2277_v51 = vpop.f32.mrf.mxu1  ;;  %v343_v55 = vadd.f32 %v2248_v40, %v3104_v4 }
 0x110   :  { %v3119_v57 = vadd.f32 %v2277_v51, %v323_v53  ;;  %v332_v62 = vpop.f32.mrf.mxu0 }
 0x111   :  { %v513_v63 = vpop.f32.mrf.mxu1  ;;  %v333_v30 = vadd.f32 %v3104_v4, %v332_v62 }
 0x112   :  { %v3121_v0 = vadd.f32 %v513_v63, %v313_v52  ;;  %v3123_v17 = vpop.f32.mrf.mxu0 }
 0x113   :  { %v2280_v2 = vpop.f32.mrf.mxu1 }
 0x114   :  { %v3126_v33 = vadd.f32 %v2280_v2, %v343_v55  ;;  %v3128_v21 = vpop.f32.mrf.mxu0 }
 0x115   :  { %v525_v49 = vpop.f32.mrf.mxu1 }
 0x116   :  { %v3130_v50 = vadd.f32 %v525_v49, %v333_v30  ;;  %v2294_v18 = vpop.f32.mrf.mxu0 }
 0x117   :  { %v3132_v56 = vpop.f32.mrf.mxu1  ;;  %v631_v61 = vadd.f32 %v2294_v18, %v460_v26 }
 0x118   :  { %v623_v1 = vpop.f32.mrf.mxu0 }
 0x119   :  { %v3134_v5 = vpop.f32.mrf.mxu1  ;;  %v624_v9 = vadd.f32 %v623_v1, %v454_v28 }
 0x11a   :  { %v2297_v15 = vpop.f32.mrf.mxu0 }
 0x11b   :  { %v2326_v16 = vpop.f32.mrf.mxu1  ;;  %v645_v22 = vadd.f32 %v2297_v15, %v472_v36 }
 0x11c   :  { %v814_v23 = vadd.f32 %v2326_v16, %v631_v61  ;;  %v637_v24 = vpop.f32.mrf.mxu0 }
 0x11d   :  { %v805_v25 = vpop.f32.mrf.mxu1  ;;  %v638_v27 = vadd.f32 %v637_v24, %v466_v58 }
 0x11e   :  { %v806_v29 = vadd.f32 %v805_v25, %v624_v9  ;;  %v2300_v26 = vpop.f32.mrf.mxu0 }
 0x11f   :  { %v2329_v31 = vpop.f32.mrf.mxu1  ;;  %v659_v32 = vadd.f32 %v2300_v26, %v484_v11 }
 0x120   :  { %v830_v35 = vadd.f32 %v2329_v31, %v645_v22  ;;  %v651_v28 = vpop.f32.mrf.mxu0 }
 0x121   :  { %v821_v47 = vpop.f32.mrf.mxu1  ;;  %v652_v48 = vadd.f32 %v651_v28, %v478_v19 }
 0x122   :  { %v822_v36 = vadd.f32 %v821_v47, %v638_v27  ;;  %v2303_v59 = vpop.f32.mrf.mxu0 }
 0x123   :  { %v2332_v7 = vpop.f32.mrf.mxu1  ;;  %v673_v8 = vadd.f32 %v2303_v59, %v496_v38 }
 0x124   :  { %v3140_v10 = vadd.f32 %v2332_v7, %v659_v32  ;;  %v665_v12 = vpop.f32.mrf.mxu0 }
 0x125   :  { %v837_v13 = vpop.f32.mrf.mxu1  ;;  %v666_v20 = vadd.f32 %v665_v12, %v490_v43 }
 0x126   :  { %v3142_v14 = vadd.f32 %v837_v13, %v652_v48  ;;  %v2306_v58 = vpop.f32.mrf.mxu0 }
 0x127   :  { %v2335_v34 = vpop.f32.mrf.mxu1  ;;  %v687_v37 = vadd.f32 %v2306_v58, %v508_v54  ;;  %v363_v58 = vadd.f32 %v3123_v17, %v3104_v4 }
 0x128   :  { %v3144_v41 = vadd.f32 %v2335_v34, %v673_v8  ;;  %v679_v11 = vpop.f32.mrf.mxu0 }
 0x129   :  { %v853_v42 = vpop.f32.mrf.mxu1  ;;  %v680_v44 = vadd.f32 %v679_v11, %v502_v39 }
 0x12a   :  { %v3146_v19 = vadd.f32 %v853_v42, %v666_v20  ;;  %v2309_v45 = vpop.f32.mrf.mxu0  ;;  %v353_v42 = vadd.f32 %v3104_v4, %v3128_v21 }
 0x12b   :  { %v2338_v46 = vpop.f32.mrf.mxu1  ;;  %v701_v17 = vadd.f32 %v2309_v45, %v3119_v57 }
 0x12c   :  { %v3148_v38 = vadd.f32 %v2338_v46, %v687_v37  ;;  %v3150_v53 = vpop.f32.mrf.mxu0 }
 0x12d   :  { %v869_v60 = vpop.f32.mrf.mxu1  ;;  %v694_v57 = vadd.f32 %v3150_v53, %v3121_v0 }
 0x12e   :  { %v3152_v43 = vadd.f32 %v869_v60, %v680_v44  ;;  %v2312_v6 = vpop.f32.mrf.mxu0  ;;  %v544_v60 = vadd.f32 %v3132_v56, %v363_v58 }
 0x12f   :  { %v2341_v40 = vpop.f32.mrf.mxu1  ;;  %v715_v11 = vadd.f32 %v2312_v6, %v3126_v33 }
 0x130   :  { %v707_v51 = vpop.f32.mrf.mxu0  ;;  %v894_v4 = vadd.f32 %v2341_v40, %v701_v17 }
 0x131   :  { %v3154_v54 = vpop.f32.mrf.mxu1 }
 0x132   :  { %v2315_v52 = vpop.f32.mrf.mxu0 }
 0x133   :  { %v2344_v55 = vpop.f32.mrf.mxu1 }
 0x134   :  { %v721_v62 = vpop.f32.mrf.mxu0 }
 0x135   :  { %v901_v39 = vpop.f32.mrf.mxu1 }
 0x136   :  { %v2358_v63 = vpop.f32.mrf.mxu0 }
 0x137   :  { %v2347_v2 = vpop.f32.mrf.mxu1  ;;  %v1015_v30 = vadd.f32 %v2358_v63, %v814_v23  ;;  %v708_v63 = vadd.f32 %v707_v51, %v3130_v50 }
 0x138   :  { %v1008_v49 = vpop.f32.mrf.mxu0 }
 0x139   :  { %v917_v18 = vpop.f32.mrf.mxu1  ;;  %v1009_v61 = vadd.f32 %v1008_v49, %v806_v29  ;;  %v538_v49 = vadd.f32 %v3134_v5, %v353_v42 }
 0x13a   :  { %v2361_v1 = vpop.f32.mrf.mxu0 }
 0x13b   :  { %v2390_v9 = vpop.f32.mrf.mxu1  ;;  %v1027_v15 = vadd.f32 %v2361_v1, %v830_v35  ;;  %v722_v33 = vadd.f32 %v721_v62, %v538_v49 }
 0x13c   :  { %v3156_v16 = vadd.f32 %v2390_v9, %v1015_v30  ;;  %v1020_v22 = vpop.f32.mrf.mxu0  ;;  %v910_v30 = vadd.f32 %v2344_v55, %v715_v11  ;;  %v729_v9 = vadd.f32 %v2315_v52, %v544_v60  ;;  %v886_v11 = vadd.f32 %v3154_v54, %v694_v57 }
 0x13d   :  { %v1173_v24 = vpop.f32.mrf.mxu1  ;;  %v1021_v25 = vadd.f32 %v1020_v22, %v822_v36  ;;  %v918_v56 = vadd.f32 %v917_v18, %v722_v33 }
 0x13e   :  { %v3158_v27 = vadd.f32 %v1173_v24, %v1009_v61  ;;  %v3160_v26 = vpop.f32.mrf.mxu0  ;;  %v926_v21 = vadd.f32 %v2347_v2, %v729_v9 }
 0x13f   :  { %v2393_v31 = vpop.f32.mrf.mxu1 }
 0x140   :  { %v3162_v32 = vadd.f32 %v2393_v31, %v1027_v15  ;;  %v3164_v28 = vpop.f32.mrf.mxu0  ;;  %v902_v15 = vadd.f32 %v901_v39, %v708_v63 }
 0x141   :  { %v1185_v23 = vpop.f32.mrf.mxu1 }
 0x142   :  { %v3166_v47 = vadd.f32 %v1185_v23, %v1021_v25  ;;  %v3168_v29 = vpop.f32.mrf.mxu0 }
 0x143   :  { %v3170_v35 = vpop.f32.mrf.mxu1 }
 0x144   :  { %v3172_v48 = vpop.f32.mrf.mxu0 }
 0x145   :  { %v3174_v59 = vpop.f32.mrf.mxu1 }
 0x146   :  { %v2370_v36 = vpop.f32.mrf.mxu0 }
 0x147   :  { %v3176_v7 = vpop.f32.mrf.mxu1  ;;  %v1063_v53 = vadd.f32 %v2370_v36, %v3148_v38 }
 0x148   :  { %v3178_v8 = vpop.f32.mrf.mxu0 }
 0x149   :  { %v3180_v12 = vpop.f32.mrf.mxu1 }
 0x14a   :  { %v2373_v13 = vpop.f32.mrf.mxu0 }
 0x14b   :  { %v2402_v20 = vpop.f32.mrf.mxu1  ;;  %v1075_v51 = vadd.f32 %v2373_v13, %v894_v4 }
 0x14c   :  { %v1068_v34 = vpop.f32.mrf.mxu0 }
 0x14d   :  { %v3184_v37 = vpop.f32.mrf.mxu1  ;;  %v1069_v13 = vadd.f32 %v1068_v34, %v886_v11  ;;  %v1228_v34 = vadd.f32 %v2402_v20, %v1063_v53 }
 0x14e   :  { %v2376_v44 = vpop.f32.mrf.mxu0 }
 0x14f   :  { %v2405_v46 = vpop.f32.mrf.mxu1  ;;  %v1087_v22 = vadd.f32 %v2376_v44, %v910_v30  ;;  %v1276_v4 = vmax.f32 %v1228_v34, 0.0 }
 0x150   :  { %v1080_v61 = vpop.f32.mrf.mxu0  ;;  %v1240_v52 = vadd.f32 %v2405_v46, %v1075_v51 }
 0x151   :  { %v1233_v1 = vpop.f32.mrf.mxu1  ;;  %v1081_v25 = vadd.f32 %v1080_v61, %v902_v15 }
 0x152   :  { %v2379_v6 = vpop.f32.mrf.mxu0  ;;  %v1278_v60 = vmax.f32 %v1240_v52, 0.0  ;;  %v1234_v46 = vadd.f32 %v1233_v1, %v1069_v13 }
 0x153   :  { %v2408_v24 = vpop.f32.mrf.mxu1  ;;  %v1099_v55 = vadd.f32 %v2379_v6, %v926_v21 }
 0x154   :  { %v1252_v31 = vadd.f32 %v2408_v24, %v1087_v22  ;;  %v1092_v23 = vpop.f32.mrf.mxu0  ;;  %v1322_v15 = vsel %vm1284_vm2, %v1278_v60, 0  ;;  %v1277_v33 = vmax.f32 %v1234_v46, 0.0  ;;  %v1057_v24 = vadd.f32 %v3178_v8, %v3152_v43 }
 0x155   :  { %v1245_v50 = vpop.f32.mrf.mxu1  ;;  %v1093_v39 = vadd.f32 %v1092_v23, %v918_v56  ;;  %v3229_v21 = vand.u32 4294901760, %v1322_v15 }
 0x156   :  { %v1280_v5 = vmax.f32 %v1252_v31, 0.0  ;;  %v1246_v58 = vadd.f32 %v1245_v50, %v1081_v25  ;;  %v1051_v50 = vadd.f32 %v3168_v29, %v3144_v41  ;;  %v1222_v43 = vadd.f32 %v3184_v37, %v1057_v24 }
 0x157   :  { %v2411_v45 = vpop.f32.mrf.mxu1  ;;  %v1319_v8 = vsel %vm1284_vm2, %v1277_v33, 0 }
 0x158   :  { %v1264_v62 = vadd.f32 %v2411_v45, %v1099_v55  ;;  %v1328_v2 = vsel %vm1284_vm2, %v1280_v5, 0  ;;  %v1279_v18 = vmax.f32 %v1246_v58, 0.0  ;;  %v1216_v51 = vadd.f32 %v3176_v7, %v1051_v50 }
 0x159   :  { %v1257_v40 = vpop.f32.mrf.mxu1  ;;  %v3198_v49 = vand.u32 4294901760, %v1328_v2  ;;  %v1316_v55 = vsel %vm1284_vm2, %v1276_v4, 0  ;;  %v3247_v5 = vsub.f32 %v1322_v15, %v3229_v21  ;;  %v3251_v58 = vand.u32 4294901760, %v1319_v8 }
 0x15a   :  { %v1282_v42 = vmax.f32 %v1264_v62, 0.0  ;;  %v1258_v44 = vadd.f32 %v1257_v40, %v1093_v39  ;;  %v1325_v54 = vsel %vm1284_vm2, %v1279_v18, 0  ;;  %v1275_v57 = vmax.f32 %v1222_v43, 0.0 }
 0x15b   :  { %v3214_v22 = vsub.f32 %v1328_v2, %v3198_v49  ;;  %v3216_v38 = vand.u32 4294901760, %v1325_v54  ;;  %v1045_v7 = vadd.f32 %v3172_v48, %v3146_v19  ;;  %v1274_v45 = vmax.f32 %v1216_v51, 0.0 }
 0x15c   :  { %v1334_v63 = vsel %vm1284_vm2, %v1282_v42, 0  ;;  %v1281_v30 = vmax.f32 %v1258_v44, 0.0  ;;  %v3260_v52 = vand.u32 4294901760, %v1316_v55  ;;  %v1458_v39 = vand.u32 4294901760, %v3247_v5 }
 0x15d   :  { %v3200_v0 = vand.u32 4294901760, %v1334_v63  ;;  %v1444_v25 = vand.u32 4294901760, %v3214_v22  ;;  %v3234_v31 = vsub.f32 %v1325_v54, %v3216_v38  ;;  %v3266_v62 = vsub.f32 %v1319_v8, %v3251_v58 }
 0x15e   :  { %v1331_v61 = vsel %vm1284_vm2, %v1281_v30, 0  ;;  %v1039_v19 = vadd.f32 %v3160_v26, %v3140_v10  ;;  %v1210_v48 = vadd.f32 %v3180_v12, %v1045_v7  ;;  %v1313_v2 = vsel %vm1284_vm2, %v1275_v57, 0 }
 0x15f   :  { %v3206_v17 = vsub.f32 %v1334_v63, %v3200_v0  ;;  %v3208_v9 = vand.u32 4294901760, %v1331_v61  ;;  %2413 = vmatpush3.xpose.msra.mxu0 %v3200_v0  ;;  %v1451_v41 = vand.u32 4294901760, %v3234_v31  ;;  %v1445_v37 = vsub.f32 %v3214_v22, %v1444_v25 }
 0x160   :  { %2414 = vmatprep.subr.mxu0 %v2721_v3  ;;  %v1204_v18 = vadd.f32 %v3170_v35, %v1039_v19  ;;  %v1310_v42 = vsel %vm1284_vm2, %v1274_v45, 0  ;;  %v3279_v44 = vsub.f32 %v1316_v55, %v3260_v52  ;;  %v3283_v13 = vand.u32 4294901760, %v1313_v2 }
 0x161   :  { %v1430_v36 = vand.u32 4294901760, %v3206_v17  ;;  %v3220_v1 = vsub.f32 %v1331_v61, %v3208_v9  ;;  %v1446_v11 = vand.u32 4294901760, %v1445_v37  ;;  %v1452_v40 = vsub.f32 %v3234_v31, %v1451_v41 }
 0x162   :  { %v1465_v10 = vand.u32 4294901760, %v3266_v62  ;;  %v1459_v12 = vsub.f32 %v3247_v5, %v1458_v39  ;;  %v1273_v60 = vmax.f32 %v1210_v48, 0.0  ;;  %v1033_v35 = vadd.f32 %v3164_v28, %v3142_v14  ;;  %v1283_v48 = vld [vmem:[#allocation8] sm:$0xff] }
 0x163   :  { %v1437_v6 = vand.u32 4294901760, %v3220_v1  ;;  %2415 = vmatpush3.xpose.msra.mxu0 %v3208_v9  ;;  %v1431_v20 = vsub.f32 %v3206_v17, %v1430_v36  ;;  %v1453_v26 = vand.u32 4294901760, %v1452_v40  ;;  %v1272_v63 = vmax.f32 %v1204_v18, 0.0 }
 0x164   :  { %2416 = vmatprep.subr.mxu0 %v2721_v3  ;;  %v3292_v30 = vand.u32 4294901760, %v1310_v42  ;;  %v1472_v53 = vand.u32 4294901760, %v3279_v44  ;;  %v3298_v46 = vsub.f32 %v1313_v2, %v3283_v13  ;;  %v1460_v54 = vand.u32 4294901760, %v1459_v12 }
 0x165   :  { %v1432_v56 = vand.u32 4294901760, %v1431_v20  ;;  %v1438_v23 = vsub.f32 %v3220_v1, %v1437_v6  ;;  %v1466_v61 = vsub.f32 %v3266_v62, %v1465_v10  ;;  %v1198_v34 = vadd.f32 %v3174_v59, %v1033_v35 }
 0x166   :  { %v1307_v14 = vsel %vm1284_vm2, %v1273_v60, 0  ;;  %v1304_v28 = vsel %vm1284_vm2, %v1272_v63, 0  ;;  %v3308_v15 = vsub.f32 %v1310_v42, %v3292_v30  ;;  %v1479_v20 = vand.u32 4294901760, %v3298_v46 }
 0x167   :  { %2417 = vmatpush3.xpose.msra.mxu0 %v3198_v49  ;;  %2448 = vmatpush3.xpose.msra.mxu1 %v1432_v56  ;;  %v1439_v29 = vand.u32 4294901760, %v1438_v23  ;;  %v3312_v33 = vand.u32 4294901760, %v1307_v14  ;;  %v1467_v24 = vand.u32 4294901760, %v1466_v61  ;;  %v1473_v59 = vsub.f32 %v3279_v44, %v1472_v53 }
 0x168   :  { %2418 = vmatprep.subr.mxu0 %v2721_v3  ;;  %2449 = vmatprep.subr.mxu1 %v2721_v3  ;;  %v1271_v4 = vmax.f32 %v1198_v34, 0.0  ;;  %v1270_v56 = vmax.f32 %v3162_v32, 0.0  ;;  %v3320_v23 = vand.u32 4294901760, %v1304_v28  ;;  %v1486_v50 = vand.u32 4294901760, %v3308_v15 }
 0x169   :  { %v3326_v43 = vsub.f32 %v1307_v14, %v3312_v33  ;;  %v1474_v8 = vand.u32 4294901760, %v1473_v59  ;;  %v1480_v51 = vsub.f32 %v3298_v46, %v1479_v20  ;;  %v1268_v40 = vmax.f32 %v3156_v16, 0.0 }
 0x16a   :  { %v1301_v55 = vsel %vm1284_vm2, %v1271_v4, 0  ;;  %v1298_v32 = vsel %vm1284_vm2, %v1270_v56, 0  ;;  %v1487_v45 = vsub.f32 %v3308_v15, %v1486_v50  ;;  %v1286_v16 = vsel %vm1284_vm2, %v1283_v48, 0 }
 0x16b   :  { %2419 = vmatpush3.xpose.msra.mxu0 %v3216_v38  ;;  %2450 = vmatpush3.xpose.msra.mxu1 %v1439_v29  ;;  %v3335_v29 = vsub.f32 %v1304_v28, %v3320_v23  ;;  %v3339_v37 = vand.u32 4294901760, %v1301_v55  ;;  %v1493_v57 = vand.u32 4294901760, %v3326_v43  ;;  %v1481_v7 = vand.u32 4294901760, %v1480_v51 }
 0x16c   :  { %2420 = vmatprep.subr.mxu0 %v2721_v3  ;;  %2451 = vmatprep.subr.mxu1 %v2721_v3  ;;  %v3348_v19 = vand.u32 4294901760, %v1298_v32  ;;  %v1488_v42 = vand.u32 4294901760, %v1487_v45  ;;  %v1292_v12 = vsel %vm1284_vm2, %v1268_v40, 0  ;;  %v1267_v34 = vmax.f32 %v3158_v27, 0.0 }
 0x16d   :  { %v1500_v2 = vand.u32 4294901760, %v3335_v29  ;;  %v3354_v18 = vsub.f32 %v1301_v55, %v3339_v37  ;;  %v3375_v14 = vand.u32 4294901760, %v1286_v16  ;;  %v3378_v28 = vand.u32 4294901760, %v1292_v12 }
 0x16e   :  { %v3364_v60 = vsub.f32 %v1298_v32, %v3348_v19  ;;  %v1289_v56 = vsel %vm1284_vm2, %v1267_v34, 0 }
 0x16f   :  { %2421 = vmatpush3.xpose.msra.mxu0 %v3229_v21  ;;  %2452 = vmatpush3.xpose.msra.mxu1 %v1446_v11  ;;  %v1269_v11 = vmax.f32 %v3166_v47, 0.0  ;;  %v1494_v47 = vsub.f32 %v3326_v43, %v1493_v57  ;;  %v1507_v63 = vand.u32 4294901760, %v3354_v18  ;;  %v1501_v61 = vsub.f32 %v3335_v29, %v1500_v2 }
 0x170   :  { %2422 = vmatprep.subr.mxu0 %v2721_v3  ;;  %2453 = vmatprep.subr.mxu1 %v2721_v3  ;;  %v3395_v51 = vsub.f32 %v1292_v12, %v3378_v28  ;;  %v3399_v55 = vand.u32 4294901760, %v1289_v56 }
 0x171   :  { %v1502_v4 = vand.u32 4294901760, %v1501_v61  ;;  %v1508_v27 = vsub.f32 %v3354_v18, %v1507_v63 }
 0x172   :  { %v1528_v40 = vand.u32 4294901760, %v3395_v51  ;;  %v3411_v48 = vsub.f32 %v1289_v56, %v3399_v55 }
 0x173   :  { %2423 = vmatpush3.xpose.msra.mxu0 %v3251_v58  ;;  %2454 = vmatpush3.xpose.msra.mxu1 %v1453_v26  ;;  %v1295_v26 = vsel %vm1284_vm2, %v1269_v11, 0 }
 0x174   :  { %2424 = vmatprep.subr.mxu0 %v2721_v3  ;;  %2455 = vmatprep.subr.mxu1 %v2721_v3  ;;  %v3368_v35 = vand.u32 4294901760, %v1295_v26 }
 0x176   :  { %v3384_v59 = vsub.f32 %v1295_v26, %v3368_v35 }
 0x177   :  { %2425 = vmatpush3.xpose.msra.mxu0 %v3260_v52  ;;  %2456 = vmatpush3.xpose.msra.mxu1 %v1460_v54  ;;  %v1495_v54 = vand.u32 4294901760, %v1494_v47 }
 0x178   :  { %2426 = vmatprep.subr.mxu0 %v2721_v3  ;;  %2457 = vmatprep.subr.mxu1 %v2721_v3  ;;  %v1521_v32 = vand.u32 4294901760, %v3384_v59 }
 0x17a   :  { %v1522_v47 = vsub.f32 %v3384_v59, %v1521_v32 }
 0x17b   :  { %2427 = vmatpush3.xpose.msra.mxu0 %v3283_v13  ;;  %2458 = vmatpush3.xpose.msra.mxu1 %v1467_v24  ;;  %v1514_v24 = vand.u32 4294901760, %v3364_v60 }
 0x17c   :  { %2428 = vmatprep.subr.mxu0 %v2721_v3  ;;  %2459 = vmatprep.subr.mxu1 %v2721_v3  ;;  %v1523_v12 = vand.u32 4294901760, %v1522_v47 }
 0x17d   :  { %v1515_v45 = vsub.f32 %v3364_v60, %v1514_v24 }
 0x17f   :  { %2429 = vmatpush3.xpose.msra.mxu0 %v3292_v30  ;;  %2460 = vmatpush3.xpose.msra.mxu1 %v1474_v8  ;;  %v3391_v8 = vsub.f32 %v1286_v16, %v3375_v14  ;;  %v1535_v16 = vand.u32 4294901760, %v3411_v48 }
 0x180   :  { %2430 = vmatprep.subr.mxu0 %v2721_v3  ;;  %2461 = vmatprep.subr.mxu1 %v2721_v3 }
 0x181   :  { %v1419_v11 = vand.u32 4294901760, %v3391_v8 }
 0x183   :  { %2431 = vmatpush3.xpose.msra.mxu0 %v3312_v33  ;;  %2462 = vmatpush3.xpose.msra.mxu1 %v1481_v7  ;;  %v1509_v7 = vand.u32 4294901760, %v1508_v27  ;;  %v1420_v26 = vsub.f32 %v3391_v8, %v1419_v11 }
 0x184   :  { %2432 = vmatprep.subr.mxu0 %v2721_v3  ;;  %2463 = vmatprep.subr.mxu1 %v2721_v3 }
 0x185   :  { %v1421_v61 = vand.u32 4294901760, %v1420_v26 }
 0x187   :  { %2433 = vmatpush3.xpose.msra.mxu0 %v3320_v23  ;;  %2464 = vmatpush3.xpose.msra.mxu1 %v1488_v42  ;;  %v1516_v42 = vand.u32 4294901760, %v1515_v45 }
 0x188   :  { %2434 = vmatprep.subr.mxu0 %v2721_v3  ;;  %2465 = vmatprep.subr.mxu1 %v2721_v3 }
 0x18b   :  { %2435 = vmatpush3.xpose.msra.mxu0 %v3339_v37  ;;  %2466 = vmatpush3.xpose.msra.mxu1 %v1495_v54  ;;  %v1529_v54 = vsub.f32 %v3395_v51, %v1528_v40 }
 0x18c   :  { %2436 = vmatprep.subr.mxu0 %v2721_v3  ;;  %2467 = vmatprep.subr.mxu1 %v2721_v3 }
 0x18d   :  { %v1530_v34 = vand.u32 4294901760, %v1529_v54 }
 0x18f   :  { %2437 = vmatpush3.xpose.msra.mxu0 %v3348_v19  ;;  %2468 = vmatpush3.xpose.msra.mxu1 %v1502_v4  ;;  %v1536_v4 = vsub.f32 %v3411_v48, %v1535_v16 }
 0x190   :  { %2438 = vmatprep.subr.mxu0 %v2721_v3  ;;  %2469 = vmatprep.subr.mxu1 %v2721_v3 }
 0x191   :  { %v1537_v27 = vand.u32 4294901760, %v1536_v4 }
 0x193   :  { %2439 = vmatpush3.xpose.msra.mxu0 %v3368_v35  ;;  %2470 = vmatpush3.xpose.msra.mxu1 %v1509_v7 }
 0x194   :  { %2440 = vmatprep.subr.mxu0 %v2721_v3  ;;  %2471 = vmatprep.subr.mxu1 %v2721_v3 }
 0x197   :  { %2441 = vmatpush3.xpose.msra.mxu0 %v3378_v28  ;;  %2472 = vmatpush3.xpose.msra.mxu1 %v1516_v42 }
 0x198   :  { %2442 = vmatprep.subr.mxu0 %v2721_v3  ;;  %2473 = vmatprep.subr.mxu1 %v2721_v3 }
 0x19b   :  { %2443 = vmatpush3.xpose.msra.mxu0 %v3399_v55  ;;  %2474 = vmatpush3.xpose.msra.mxu1 %v1523_v12 }
 0x19c   :  { %2475 = vmatprep.subr.mxu1 %v2721_v3  ;;  %2482 = vmatprep.subr.mxu0 %v2721_v3 }
 0x19e   :  { %2445 = vmatmul.mubr.f32.vlgmr.msra.gmra.mxu0 %v1421_v61 }
 0x19f   :  { %2476 = vmatpush3.xpose.msra.mxu1 %v1530_v34  ;;  %2483 = vmatpush3.xpose.msra.mxu0 %v3206_v17 }
 0x1a0   :  { %2477 = vmatprep.subr.mxu1 %v2721_v3  ;;  %2484 = vmatprep.subr.mxu0 %v2721_v3 }
 0x1a1   :  { %2514 = vmatprep.mubr.msk.f32.mxu0 %vm2722_vm1, %v2721_v3 }
 0x1a3   :  { %2478 = vmatpush3.xpose.msra.mxu1 %v1537_v27  ;;  %2485 = vmatpush3.xpose.msra.mxu0 %v3220_v1 }
 0x1a4   :  { %2486 = vmatprep.subr.mxu0 %v2721_v3  ;;  %2517 = vmatprep.subr.mxu1 %v2721_v3 }
 0x1a6   :  { %2480 = vmatmul.mubr.f32.vlgmr.msra.gmra.mxu1 %v3375_v14 }
 0x1a7   :  { %2487 = vmatpush3.xpose.msra.mxu0 %v3214_v22  ;;  %2518 = vmatpush3.xpose.msra.mxu1 %v3200_v0 }
 0x1a8   :  { %2488 = vmatprep.subr.mxu0 %v2721_v3  ;;  %2519 = vmatprep.subr.mxu1 %v2721_v3 }
 0x1a9   :  { %2549 = vmatprep.mubr.msk.f32.mxu1 %vm2722_vm1, %v2721_v3 }
 0x1ab   :  { %2489 = vmatpush3.xpose.msra.mxu0 %v3234_v31  ;;  %2520 = vmatpush3.xpose.msra.mxu1 %v3208_v9 }
 0x1ac   :  { %2490 = vmatprep.subr.mxu0 %v2721_v3  ;;  %2521 = vmatprep.subr.mxu1 %v2721_v3 }
 0x1af   :  { %2491 = vmatpush3.xpose.msra.mxu0 %v3247_v5  ;;  %2522 = vmatpush3.xpose.msra.mxu1 %v3198_v49 }
 0x1b0   :  { %2492 = vmatprep.subr.mxu0 %v2721_v3  ;;  %2523 = vmatprep.subr.mxu1 %v2721_v3 }
 0x1b3   :  { %2493 = vmatpush3.xpose.msra.mxu0 %v3266_v62  ;;  %2524 = vmatpush3.xpose.msra.mxu1 %v3216_v38 }
 0x1b4   :  { %2494 = vmatprep.subr.mxu0 %v2721_v3  ;;  %2525 = vmatprep.subr.mxu1 %v2721_v3 }
 0x1b7   :  { %2495 = vmatpush3.xpose.msra.mxu0 %v3279_v44  ;;  %2526 = vmatpush3.xpose.msra.mxu1 %v3229_v21 }
 0x1b8   :  { %2496 = vmatprep.subr.mxu0 %v2721_v3  ;;  %2527 = vmatprep.subr.mxu1 %v2721_v3 }
 0x1bb   :  { %2497 = vmatpush3.xpose.msra.mxu0 %v3298_v46  ;;  %2528 = vmatpush3.xpose.msra.mxu1 %v3251_v58 }
 0x1bc   :  { %2498 = vmatprep.subr.mxu0 %v2721_v3  ;;  %2529 = vmatprep.subr.mxu1 %v2721_v3 }
 0x1bf   :  { %2499 = vmatpush3.xpose.msra.mxu0 %v3308_v15  ;;  %2530 = vmatpush3.xpose.msra.mxu1 %v3260_v52 }
 0x1c0   :  { %2500 = vmatprep.subr.mxu0 %v2721_v3  ;;  %2531 = vmatprep.subr.mxu1 %v2721_v3 }
 0x1c3   :  { %2501 = vmatpush3.xpose.msra.mxu0 %v3326_v43  ;;  %2532 = vmatpush3.xpose.msra.mxu1 %v3283_v13 }
 0x1c4   :  { %2502 = vmatprep.subr.mxu0 %v2721_v3  ;;  %2533 = vmatprep.subr.mxu1 %v2721_v3 }
 0x1c7   :  { %2503 = vmatpush3.xpose.msra.mxu0 %v3335_v29  ;;  %2534 = vmatpush3.xpose.msra.mxu1 %v3292_v30 }
 0x1c8   :  { %2504 = vmatprep.subr.mxu0 %v2721_v3  ;;  %2535 = vmatprep.subr.mxu1 %v2721_v3 }
 0x1cb   :  { %2505 = vmatpush3.xpose.msra.mxu0 %v3354_v18  ;;  %2536 = vmatpush3.xpose.msra.mxu1 %v3312_v33 }
 0x1cc   :  { %2506 = vmatprep.subr.mxu0 %v2721_v3  ;;  %2537 = vmatprep.subr.mxu1 %v2721_v3 }
 0x1cf   :  { %2507 = vmatpush3.xpose.msra.mxu0 %v3364_v60  ;;  %2538 = vmatpush3.xpose.msra.mxu1 %v3320_v23 }
 0x1d0   :  { %2508 = vmatprep.subr.mxu0 %v2721_v3  ;;  %2539 = vmatprep.subr.mxu1 %v2721_v3 }
 0x1d3   :  { %2509 = vmatpush3.xpose.msra.mxu0 %v3384_v59  ;;  %2540 = vmatpush3.xpose.msra.mxu1 %v3339_v37 }
 0x1d4   :  { %2510 = vmatprep.subr.mxu0 %v2721_v3  ;;  %2541 = vmatprep.subr.mxu1 %v2721_v3 }
 0x1d7   :  { %2511 = vmatpush3.xpose.msra.mxu0 %v3395_v51  ;;  %2542 = vmatpush3.xpose.msra.mxu1 %v3348_v19 }
 0x1d8   :  { %2512 = vmatprep.subr.mxu0 %v2721_v3  ;;  %2543 = vmatprep.subr.mxu1 %v2721_v3 }
 0x1db   :  { %2513 = vmatpush3.xpose.msra.mxu0 %v3411_v48  ;;  %2544 = vmatpush3.xpose.msra.mxu1 %v3368_v35 }
 0x1dc   :  { %2545 = vmatprep.subr.mxu1 %v2721_v3  ;;  %2552 = vmatprep.subr.mxu0 %v2721_v3 }
 0x1de   :  { %2515 = vmatmul.mubr.f32.vlgmr.msra.gmra.mxu0 %v3391_v8 }
 0x1df   :  { %2546 = vmatpush3.xpose.msra.mxu1 %v3378_v28  ;;  %2553 = vmatpush3.xpose.msra.mxu0 %v1430_v36 }
 0x1e0   :  { %2547 = vmatprep.subr.mxu1 %v2721_v3  ;;  %2554 = vmatprep.subr.mxu0 %v2721_v3 }
 0x1e1   :  { %2584 = vmatprep.mubr.msk.f32.mxu0 %vm2722_vm1, %v2721_v3 }
 0x1e3   :  { %2548 = vmatpush3.xpose.msra.mxu1 %v3399_v55  ;;  %2555 = vmatpush3.xpose.msra.mxu0 %v1437_v6 }
 0x1e4   :  { %2556 = vmatprep.subr.mxu0 %v2721_v3  ;;  %2587 = vmatprep.subr.mxu1 %v2721_v3 }
 0x1e6   :  { %2550 = vmatmul.mubr.f32.vlgmr.msra.gmra.mxu1 %v1419_v11 }
 0x1e7   :  { %2557 = vmatpush3.xpose.msra.mxu0 %v1444_v25  ;;  %2588 = vmatpush3.xpose.msra.mxu1 %v3200_v0 }
 0x1e8   :  { %2558 = vmatprep.subr.mxu0 %v2721_v3  ;;  %2589 = vmatprep.subr.mxu1 %v2721_v3 }
 0x1e9   :  { %2619 = vmatprep.mubr.msk.f32.mxu1 %vm2722_vm1, %v2721_v3 }
 0x1eb   :  { %2559 = vmatpush3.xpose.msra.mxu0 %v1451_v41  ;;  %2590 = vmatpush3.xpose.msra.mxu1 %v3208_v9 }
 0x1ec   :  { %2560 = vmatprep.subr.mxu0 %v2721_v3  ;;  %2591 = vmatprep.subr.mxu1 %v2721_v3 }
 0x1ef   :  { %2561 = vmatpush3.xpose.msra.mxu0 %v1458_v39  ;;  %2592 = vmatpush3.xpose.msra.mxu1 %v3198_v49 }
 0x1f0   :  { %2562 = vmatprep.subr.mxu0 %v2721_v3  ;;  %2593 = vmatprep.subr.mxu1 %v2721_v3 }
 0x1f3   :  { %2563 = vmatpush3.xpose.msra.mxu0 %v1465_v10  ;;  %2594 = vmatpush3.xpose.msra.mxu1 %v3216_v38 }
 0x1f4   :  { %2564 = vmatprep.subr.mxu0 %v2721_v3  ;;  %2595 = vmatprep.subr.mxu1 %v2721_v3 }
 0x1f7   :  { %2565 = vmatpush3.xpose.msra.mxu0 %v1472_v53  ;;  %2596 = vmatpush3.xpose.msra.mxu1 %v3229_v21 }
 0x1f8   :  { %2566 = vmatprep.subr.mxu0 %v2721_v3  ;;  %2597 = vmatprep.subr.mxu1 %v2721_v3 }
 0x1fb   :  { %2567 = vmatpush3.xpose.msra.mxu0 %v1479_v20  ;;  %2598 = vmatpush3.xpose.msra.mxu1 %v3251_v58 }
 0x1fc   :  { %2568 = vmatprep.subr.mxu0 %v2721_v3  ;;  %2599 = vmatprep.subr.mxu1 %v2721_v3 }
 0x1ff   :  { %2569 = vmatpush3.xpose.msra.mxu0 %v1486_v50  ;;  %2600 = vmatpush3.xpose.msra.mxu1 %v3260_v52 }
 0x200   :  { %2570 = vmatprep.subr.mxu0 %v2721_v3  ;;  %2601 = vmatprep.subr.mxu1 %v2721_v3 }
 0x203   :  { %2571 = vmatpush3.xpose.msra.mxu0 %v1493_v57  ;;  %2602 = vmatpush3.xpose.msra.mxu1 %v3283_v13 }
 0x204   :  { %2572 = vmatprep.subr.mxu0 %v2721_v3  ;;  %2603 = vmatprep.subr.mxu1 %v2721_v3 }
 0x207   :  { %2573 = vmatpush3.xpose.msra.mxu0 %v1500_v2  ;;  %2604 = vmatpush3.xpose.msra.mxu1 %v3292_v30 }
 0x208   :  { %2574 = vmatprep.subr.mxu0 %v2721_v3  ;;  %2605 = vmatprep.subr.mxu1 %v2721_v3 }
 0x20b   :  { %2575 = vmatpush3.xpose.msra.mxu0 %v1507_v63  ;;  %2606 = vmatpush3.xpose.msra.mxu1 %v3312_v33 }
 0x20c   :  { %2576 = vmatprep.subr.mxu0 %v2721_v3  ;;  %2607 = vmatprep.subr.mxu1 %v2721_v3 }
 0x20f   :  { %2577 = vmatpush3.xpose.msra.mxu0 %v1514_v24  ;;  %2608 = vmatpush3.xpose.msra.mxu1 %v3320_v23 }
 0x210   :  { %2578 = vmatprep.subr.mxu0 %v2721_v3  ;;  %2609 = vmatprep.subr.mxu1 %v2721_v3 }
 0x213   :  { %2579 = vmatpush3.xpose.msra.mxu0 %v1521_v32  ;;  %2610 = vmatpush3.xpose.msra.mxu1 %v3339_v37 }
 0x214   :  { %2580 = vmatprep.subr.mxu0 %v2721_v3  ;;  %2611 = vmatprep.subr.mxu1 %v2721_v3 }
 0x217   :  { %2581 = vmatpush3.xpose.msra.mxu0 %v1528_v40  ;;  %2612 = vmatpush3.xpose.msra.mxu1 %v3348_v19 }
 0x218   :  { %2582 = vmatprep.subr.mxu0 %v2721_v3  ;;  %2613 = vmatprep.subr.mxu1 %v2721_v3 }
 0x21b   :  { %2583 = vmatpush3.xpose.msra.mxu0 %v1535_v16  ;;  %2614 = vmatpush3.xpose.msra.mxu1 %v3368_v35 }
 0x21c   :  { %2615 = vmatprep.subr.mxu1 %v2721_v3 }
 0x21e   :  { %2585 = vmatmul.mubr.f32.vlgmr.msra.gmra.mxu0 %v3375_v14 }
 0x21f   :  { %2616 = vmatpush3.xpose.msra.mxu1 %v3378_v28 }
 0x220   :  { %2617 = vmatprep.subr.mxu1 %v2721_v3  ;;  %v1978_v3 = vstv %s3600_s4 }
 0x223   :  { %2618 = vmatpush3.xpose.msra.mxu1 %v3399_v55 }
 0x226   :  { %2620 = vmatmul.mubr.f32.vlgmr.msra.gmra.mxu1 %v3375_v14 }
 0x25e   :  { %v1423_v49 = vpop.f32.mrf.mxu0 }
 0x260   :  { %v2446_v0 = vpop.f32.mrf.mxu0 }
 0x266   :  { %v1574_v17 = vpop.f32.mrf.mxu1 }
 0x267   :  { %v1575_v9 = vadd.f32 %v1574_v17, %v1423_v49 }
 0x268   :  { %v2481_v22 = vpop.f32.mrf.mxu1 }
 0x29e   :  { %v1678_v38 = vpop.f32.mrf.mxu0 }
 0x29f   :  { %v1679_v36 = vadd.f32 %v1678_v38, %v1575_v9 }
 0x2a0   :  { %v2516_v1 = vpop.f32.mrf.mxu0 }
 0x2a6   :  { %v1767_v6 = vpop.f32.mrf.mxu1 }
 0x2a7   :  { %v1768_v5 = vadd.f32 %v1767_v6, %v1679_v36 }
 0x2a8   :  { %v2551_v21 = vpop.f32.mrf.mxu1 }
 0x2de   :  { %v1886_v25 = vpop.f32.mrf.mxu0 }
 0x2df   :  { %v1887_v58 = vadd.f32 %v1886_v25, %v1768_v5 }
 0x2e0   :  { %v2586_v31 = vpop.f32.mrf.mxu0 }
 0x2e6   :  { %v1973_v41 = vpop.f32.mrf.mxu1 }
 0x2e7   :  { %v1974_v52 = vadd.f32 %v1973_v41, %v1887_v58 }
 0x2e8   :  { %v2621_v39 = vpop.f32.mrf.mxu1 }
 0x2e9   :  { %v1979_v62 = vadd.f32 %v1978_v3, %v1974_v52 }
 0x2eb   :  { %1980 = vst [vmem:[#allocation9] sm:$0x1] %v1979_v62 }
 0x2ec   :  { %2701 = shalt.err (!%p2698_p5)
}
 0x2ed   :  { %1990 = dma.vmem_to_hbm [thread:$0]  %s1988_s12, 16, %s3601_s5, [#allocation5]  }
 0x2ee   :  { %2714 = dma.done.wait [#allocation5], 16  }
 0x2ef   :  { %2715 = vsyncadd [#allocation5], 4294967280 }
 0x2f0   :  { %1994 = vsyncpa [#allocation4], 1 }
 0x2f1   :  { %1995 = vsyncpa [#allocation7], 1 }
 0x2f2   :  { %1996 = vsyncpa [#allocation5], 1 }

</bundles_post_ra>
